<compile_context>
chip_gen: v7x
topology: tpu7x:2x2x1
jax: 0.10.0
libtpu: 0.0.40
codegen_flags: <defaults>
</compile_context>

<pallas_src>
import numpy as np
import jax
import jax.numpy as jnp
from jax.experimental import pallas as pl
from jax.experimental.pallas import tpu as pltpu


def tagger_kernel(hidden_ref, w_ref, b_ref, y_ref, mask_ref,
                  logits_ref, preds_ref, nll_ref):
    """Grid = (token_tiles, L).  Per step: one MXU matmul of a (TM, D) hidden
    tile against the pre-scaled per-layer weight, accumulated in the f32
    logits output block (resident across the L axis).  On the last layer:
    bias add, argmax predictions and masked per-token cross-entropy."""
    l = pl.program_id(1)
    n_l = pl.num_programs(1)
    CP = logits_ref.shape[-1]

    h = hidden_ref[0]                      # (TM, D), streamed dtype (e.g. bf16)
    w_l = w_ref[l]                         # (D, CP), already softmax(lw)[l] * W

    @pl.when(l == 0)
    def _():
        logits_ref[...] = jnp.zeros_like(logits_ref)

    logits_ref[...] += jnp.dot(h, w_l, preferred_element_type=jnp.float32)

    @pl.when(l == n_l - 1)
    def _():
        logits = logits_ref[...] + b_ref[...]          # pads get -1e30 bias
        logits_ref[...] = logits

        # argmax (first maximal index, like torch.argmax); reuses maxv below.
        maxv = jnp.max(logits, axis=-1, keepdims=True)                 # (TM,1)
        ids = jax.lax.broadcasted_iota(jnp.int32, logits.shape, 1)     # (TM,CP)
        preds = jnp.min(jnp.where(logits == maxv, ids, CP),
                        axis=-1, keepdims=True)
        preds_ref[...] = preds.astype(jnp.int32)

        # CrossEntropyLoss(reduction='none', ignore_index=-100), then pad mask.
        y = y_ref[...]                                                  # (TM,1)
        lse = maxv + jnp.log(jnp.sum(jnp.exp(logits - maxv),
                                     axis=-1, keepdims=True))
        sel = jnp.sum(jnp.where(ids == y, logits, 0.0),
                      axis=-1, keepdims=True)
        valid = (y != -100).astype(jnp.float32)
        nll_ref[...] = (lse - sel) * valid * mask_ref[...]


def big_transformer_tagger_forward(all_hidden_states, layer_weights, W, b, y,
                                   word_mask, *, tile_rows=512):
    """all_hidden_states: (L, N, S, D)  -- last `aggregate_num` layers (bf16 ok)
       layer_weights:     (L,)          -- nn.Parameter from __init__
       W:                 (D, C)        -- hidden2tags weight (transposed vs torch)
       b:                 (C,)          -- hidden2tags bias
       y:                 (N, S) int32  -- labels (-100 = ignore)
       word_mask:         (N, S)        -- pad mask
       Returns (predictions (N,S) int32, loss scalar, logits (N,S,C))."""
    L, N, S, D = all_hidden_states.shape
    C = W.shape[1]
    NS = N * S
    CP = max(128, ((C + 127) // 128) * 128)       # lane-dense padded class dim
    dt = all_hidden_states.dtype

    # Token-tile size: multiple of 8 sublanes, capped at the (rounded) NS.
    tm = min(int(tile_rows), ((NS + 7) // 8) * 8)
    tm = max(8, ((tm + 7) // 8) * 8)
    NS_p = ((NS + tm - 1) // tm) * tm
    n_tiles = NS_p // tm

    # Inputs (no up-cast of hidden; pad tokens with zeros / -100 / mask 0).
    hidden = all_hidden_states.reshape(L, NS, D)
    if NS_p != NS:
        hidden = jnp.pad(hidden, ((0, 0), (0, NS_p - NS), (0, 0)))

    wsoft = jax.nn.softmax(layer_weights.astype(jnp.float32))           # (L,)
    W_pad = jnp.pad(W.astype(jnp.float32), ((0, 0), (0, CP - C)))       # (D,CP)
    W_scaled = (wsoft[:, None, None] * W_pad[None]).astype(dt)          # (L,D,CP)
    b_pad = jnp.full((1, CP), -1e30, jnp.float32)
    b_pad = b_pad.at[0, :C].set(b.astype(jnp.float32))

    y2 = jnp.pad(y.reshape(NS).astype(jnp.int32), (0, NS_p - NS),
                 constant_values=-100).reshape(NS_p, 1)
    mask2 = jnp.pad(word_mask.reshape(NS).astype(jnp.float32),
                    (0, NS_p - NS)).reshape(NS_p, 1)

    itemsize = jnp.dtype(dt).itemsize
    cost = pl.CostEstimate(
        flops=2 * L * NS_p * D * CP,
        transcendentals=NS_p * CP,
        bytes_accessed=(L * NS_p * D * itemsize + L * D * CP * itemsize
                        + NS_p * CP * 4 + NS_p * 16),
    )

    logits_p, preds_p, nll_p = pl.pallas_call(
        tagger_kernel,
        grid=(n_tiles, L),
        in_specs=[
            pl.BlockSpec((1, tm, D), lambda i, l: (l, i, 0)),     # hidden tile
            pl.BlockSpec((L, D, CP), lambda i, l: (0, 0, 0)),     # W_scaled (resident)
            pl.BlockSpec((1, CP), lambda i, l: (0, 0)),           # bias (resident)
            pl.BlockSpec((tm, 1), lambda i, l: (i, 0)),           # labels
            pl.BlockSpec((tm, 1), lambda i, l: (i, 0)),           # word mask
        ],
        out_specs=(
            pl.BlockSpec((tm, CP), lambda i, l: (i, 0)),          # logits (acc over l)
            pl.BlockSpec((tm, 1), lambda i, l: (i, 0)),           # predictions
            pl.BlockSpec((tm, 1), lambda i, l: (i, 0)),           # masked per-token nll
        ),
        out_shape=(
            jax.ShapeDtypeStruct((NS_p, CP), jnp.float32),
            jax.ShapeDtypeStruct((NS_p, 1), jnp.int32),
            jax.ShapeDtypeStruct((NS_p, 1), jnp.float32),
        ),
        compiler_params=pltpu.CompilerParams(
            dimension_semantics=("parallel", "arbitrary")),
        cost_estimate=cost,
    )(hidden, W_scaled, b_pad, y2, mask2)

    logits = logits_p[:NS, :C].reshape(N, S, C)
    preds = preds_p[:NS, 0].reshape(N, S)
    loss = jnp.sum(nll_p[:NS, 0]) / jnp.sum(word_mask.astype(jnp.float32))
    return preds, loss, logits


def reference_forward(all_hidden_states, layer_weights, W, b, y, word_mask):
    ws = jax.nn.softmax(layer_weights.astype(jnp.float32))
    h = jnp.einsum('l,lnsd->nsd', ws, all_hidden_states.astype(jnp.float32))
    logits = jnp.einsum('nsd,dc->nsc', h, W.astype(jnp.float32)) + b.astype(jnp.float32)
    preds = jnp.argmax(logits, axis=-1).astype(jnp.int32)
    logz = jax.scipy.special.logsumexp(logits, axis=-1)
    ysafe = jnp.where(y == -100, 0, y)
    sel = jnp.take_along_axis(logits, ysafe[..., None], axis=-1)[..., 0]
    nll = (logz - sel) * (y != -100).astype(jnp.float32)
    loss = jnp.sum(nll * word_mask) / jnp.sum(word_mask)
    return preds, loss, logits


if __name__ == "__main__":
    # Small shapes consistent with the module's forward:
    # batch N=2, (word-level) seq S=8, BigTransformerDim D=32,
    # classes_num C=5, aggregate_num L=4.
    N, S, D, C, L = 2, 8, 32, 5, 4

    key = jax.random.PRNGKey(0)
    k_h, k_lw, k_w, k_y = jax.random.split(key, 4)

    # Stub for the external BigTransformer: deterministic per-layer hidden
    # states, kept in bf16 (streamed to the MXU without up-casting).
    all_hidden_states = jax.random.normal(
        k_h, (L, N, S, D), dtype=jnp.float32).astype(jnp.bfloat16)
    # __init__ uses zeros for layer_weights; small deterministic values here
    # so the softmax aggregation path is exercised non-trivially.
    layer_weights = 0.1 * jax.random.normal(k_lw, (L,), dtype=jnp.float32)
    W = (jax.random.normal(k_w, (D, C), dtype=jnp.float32) / np.sqrt(D)).astype(jnp.float32)
    b = jnp.zeros((C,), dtype=jnp.float32)

    word_mask = jnp.ones((N, S), dtype=jnp.float32)
    word_mask = word_mask.at[1, 6:].set(0.0)            # some padded positions
    y = jax.random.randint(k_y, (N, S), 0, C).astype(jnp.int32)
    y = jnp.where(word_mask > 0, y, -100)               # ignore_index at pads

    if float(jnp.sum(word_mask)) == 0.0:
        raise ValueError("Thank you, but we don't accept inputs which have "
                         "nothing but pads according to the pad mask.")

    # tile_rows=8 so the small demo still exercises a multi-tile grid (2 x 4).
    preds, loss, logits = big_transformer_tagger_forward(
        all_hidden_states, layer_weights, W, b, y, word_mask, tile_rows=8)
    jax.block_until_ready((preds, loss, logits))

    ref_preds, ref_loss, ref_logits = reference_forward(
        all_hidden_states, layer_weights, W, b, y, word_mask)

    logits_np = np.asarray(logits, dtype=np.float32)
    ref_logits_np = np.asarray(ref_logits, dtype=np.float32)
    assert np.allclose(logits_np, ref_logits_np, atol=5e-2), "logits mismatch"
    assert np.allclose(float(loss), float(ref_loss), atol=2e-2), "loss mismatch"

    preds_np = np.asarray(preds)
    ref_preds_np = np.asarray(ref_preds)
    mism = preds_np != ref_preds_np
    if mism.any():
        srt = np.sort(ref_logits_np, axis=-1)
        gap = srt[..., -1] - srt[..., -2]
        assert np.all(gap[mism] < 5e-2), \
            "prediction mismatch beyond bf16 tie tolerance"

    print("KERNEL_OK")
</pallas_src>

<mosaic_0001>
module attributes {stable_mosaic.version = 11 : i64} {
  func.func @tagger_kernel(%arg0: i32, %arg1: i32, %arg2: memref<1x8x32xbf16, #tpu.memory_space<vmem>>, %arg3: memref<4x32x128xbf16, #tpu.memory_space<vmem>>, %arg4: memref<1x128xf32, #tpu.memory_space<vmem>>, %arg5: memref<8x1xi32, #tpu.memory_space<vmem>>, %arg6: memref<8x1xf32, #tpu.memory_space<vmem>>, %arg7: memref<8x128xf32, #tpu.memory_space<vmem>>, %arg8: memref<8x1xi32, #tpu.memory_space<vmem>>, %arg9: memref<8x1xf32, #tpu.memory_space<vmem>>) attributes {dimension_semantics = [#tpu.dimension_semantics<parallel>, #tpu.dimension_semantics<arbitrary>], iteration_bounds = array<i64: 2, 4>, scalar_prefetch = 0 : i64, scratch_operands = 0 : i64, tpu.core_type = #tpu.core_type<tc>, window_params = [{transform_indices = @transform_0, window_bounds = array<i64: 1, 8, 32>}, {pipeline_mode = #tpu.pipeline_mode<synchronous>, transform_indices = @transform_1, window_bounds = array<i64: 4, 32, 128>}, {pipeline_mode = #tpu.pipeline_mode<synchronous>, transform_indices = @transform_2, window_bounds = array<i64: 1, 128>}, {transform_indices = @transform_3, window_bounds = array<i64: 8, 1>}, {transform_indices = @transform_4, window_bounds = array<i64: 8, 1>}, {transform_indices = @transform_5, window_bounds = array<i64: 8, 128>}, {transform_indices = @transform_6, window_bounds = array<i64: 8, 1>}, {transform_indices = @transform_7, window_bounds = array<i64: 8, 1>}]} {
    %c0 = arith.constant 0 : index
    %c0_0 = arith.constant 0 : index
    %c0_1 = arith.constant 0 : index
    %0 = vector.load %arg2[%c0, %c0_0, %c0_1] : memref<1x8x32xbf16, #tpu.memory_space<vmem>>, vector<1x8x32xbf16>
    %1 = vector.shape_cast %0 : vector<1x8x32xbf16> to vector<8x32xbf16>
    %2 = arith.index_cast %arg1 : i32 to index
    %c0_2 = arith.constant 0 : index
    %c0_3 = arith.constant 0 : index
    %3 = vector.load %arg3[%2, %c0_2, %c0_3] : memref<4x32x128xbf16, #tpu.memory_space<vmem>>, vector<1x32x128xbf16>
    %4 = vector.shape_cast %3 : vector<1x32x128xbf16> to vector<32x128xbf16>
    %c0_i32 = arith.constant 0 : i32
    %5 = arith.cmpi eq, %arg1, %c0_i32 : i32
    %6 = arith.extui %5 : i1 to i32
    %c0_i32_4 = arith.constant 0 : i32
    %7 = arith.cmpi ne, %6, %c0_i32_4 : i32
    scf.if %7 {
      %cst_10 = arith.constant 0.000000e+00 : f32
      %15 = vector.broadcast %cst_10 : f32 to vector<8x128xf32>
      %c0_11 = arith.constant 0 : index
      %c0_12 = arith.constant 0 : index
      %16 = vector.load %arg7[%c0_11, %c0_12] : memref<8x128xf32, #tpu.memory_space<vmem>>, vector<8x128xf32>
      tpu.vector_store %arg7[%c0_11, %c0_12], %15 {strides = array<i32>} : memref<8x128xf32, #tpu.memory_space<vmem>>, vector<8x128xf32>,
    } else {
    }
    %c0_5 = arith.constant 0 : index
    %c0_6 = arith.constant 0 : index
    %8 = vector.load %arg7[%c0_5, %c0_6] : memref<8x128xf32, #tpu.memory_space<vmem>>, vector<8x128xf32>
    %cst = arith.constant dense<0.000000e+00> : vector<8x128xf32>
    %9 = tpu.matmul %1, %4, %cst {dimension_numbers = #tpu.dot_dimension_numbers<[1], [0], [0], [1], [0, 0, 1, 1], [], []>} : vector<8x32xbf16>, vector<32x128xbf16>, vector<8x128xf32> -> vector<8x128xf32>
    %10 = arith.addf %8, %9 : vector<8x128xf32>
    %c0_7 = arith.constant 0 : index
    %c0_8 = arith.constant 0 : index
    %11 = vector.load %arg7[%c0_7, %c0_8] : memref<8x128xf32, #tpu.memory_space<vmem>>, vector<8x128xf32>
    tpu.vector_store %arg7[%c0_7, %c0_8], %10 {strides = array<i32>} : memref<8x128xf32, #tpu.memory_space<vmem>>, vector<8x128xf32>,
    %c3_i32 = arith.constant 3 : i32
    %12 = arith.cmpi eq, %arg1, %c3_i32 : i32
    %13 = arith.extui %12 : i1 to i32
    %c0_i32_9 = arith.constant 0 : i32
    %14 = arith.cmpi ne, %13, %c0_i32_9 : i32
    scf.if %14 {
      %c0_10 = arith.constant 0 : index
      %c0_11 = arith.constant 0 : index
      %15 = vector.load %arg7[%c0_10, %c0_11] : memref<8x128xf32, #tpu.memory_space<vmem>>, vector<8x128xf32>
      %c0_12 = arith.constant 0 : index
      %c0_13 = arith.constant 0 : index
      %16 = vector.load %arg4[%c0_12, %c0_13] : memref<1x128xf32, #tpu.memory_space<vmem>>, vector<1x128xf32>
      %17 = vector.broadcast %16 : vector<1x128xf32> to vector<8x128xf32>
      %18 = arith.addf %15, %17 : vector<8x128xf32>
      %c0_14 = arith.constant 0 : index
      %c0_15 = arith.constant 0 : index
      %19 = vector.load %arg7[%c0_14, %c0_15] : memref<8x128xf32, #tpu.memory_space<vmem>>, vector<8x128xf32>
      tpu.vector_store %arg7[%c0_14, %c0_15], %18 {strides = array<i32>} : memref<8x128xf32, #tpu.memory_space<vmem>>, vector<8x128xf32>,
      %cst_16 = arith.constant dense<0xFF800000> : vector<8xf32>
      %20 = vector.multi_reduction <maximumf>, %18, %cst_16 [1] : vector<8x128xf32> to vector<8xf32>
      %21 = vector.shape_cast %20 : vector<8xf32> to vector<8x1xf32>
      %22 = tpu.iota {dimensions = array<i32: 1>} : vector<8x128xi32>
      %23 = vector.broadcast %21 : vector<8x1xf32> to vector<8x128xf32>
      %24 = arith.cmpf oeq, %18, %23 : vector<8x128xf32>
      %c128_i32 = arith.constant 128 : i32
      %25 = vector.broadcast %c128_i32 : i32 to vector<8x128xi32>
      %26 = arith.select %24, %22, %25 : vector<8x128xi1>, vector<8x128xi32>
      %cst_17 = arith.constant dense<2147483647> : vector<8xi32>
      %27 = vector.multi_reduction <minsi>, %26, %cst_17 [1] : vector<8x128xi32> to vector<8xi32>
      %28 = vector.shape_cast %27 : vector<8xi32> to vector<8x1xi32>
      %c0_18 = arith.constant 0 : index
      %c0_19 = arith.constant 0 : index
      %29 = vector.load %arg8[%c0_18, %c0_19] : memref<8x1xi32, #tpu.memory_space<vmem>>, vector<8x1xi32>
      tpu.vector_store %arg8[%c0_18, %c0_19], %28 {strides = array<i32>} : memref<8x1xi32, #tpu.memory_space<vmem>>, vector<8x1xi32>,
      %c0_20 = arith.constant 0 : index
      %c0_21 = arith.constant 0 : index
      %30 = vector.load %arg5[%c0_20, %c0_21] : memref<8x1xi32, #tpu.memory_space<vmem>>, vector<8x1xi32>
      %31 = vector.broadcast %21 : vector<8x1xf32> to vector<8x128xf32>
      %32 = arith.subf %18, %31 : vector<8x128xf32>
      %33 = math.exp %32 : vector<8x128xf32>
      %cst_22 = arith.constant dense<0.000000e+00> : vector<8xf32>
      %34 = vector.multi_reduction <add>, %33, %cst_22 [1] : vector<8x128xf32> to vector<8xf32>
      %35 = vector.shape_cast %34 : vector<8xf32> to vector<8x1xf32>
      %36 = math.log %35 : vector<8x1xf32>
      %37 = arith.addf %21, %36 : vector<8x1xf32>
      %38 = vector.broadcast %30 : vector<8x1xi32> to vector<8x128xi32>
      %39 = arith.cmpi eq, %22, %38 : vector<8x128xi32>
      %cst_23 = arith.constant 0.000000e+00 : f32
      %40 = vector.broadcast %cst_23 : f32 to vector<8x128xf32>
      %41 = arith.select %39, %18, %40 : vector<8x128xi1>, vector<8x128xf32>
      %cst_24 = arith.constant dense<0.000000e+00> : vector<8xf32>
      %42 = vector.multi_reduction <add>, %41, %cst_24 [1] : vector<8x128xf32> to vector<8xf32>
      %43 = vector.shape_cast %42 : vector<8xf32> to vector<8x1xf32>
      %c-100_i32 = arith.constant -100 : i32
      %44 = vector.broadcast %c-100_i32 : i32 to vector<8x1xi32>
      %45 = arith.cmpi ne, %30, %44 : vector<8x1xi32>
      %46 = arith.extui %45 : vector<8x1xi1> to vector<8x1xi32>
      %47 = arith.sitofp %46 : vector<8x1xi32> to vector<8x1xf32>
      %48 = arith.subf %37, %43 : vector<8x1xf32>
      %49 = arith.mulf %48, %47 : vector<8x1xf32>
      %c0_25 = arith.constant 0 : index
      %c0_26 = arith.constant 0 : index
      %50 = vector.load %arg6[%c0_25, %c0_26] : memref<8x1xf32, #tpu.memory_space<vmem>>, vector<8x1xf32>
      %51 = arith.mulf %49, %50 : vector<8x1xf32>
      %c0_27 = arith.constant 0 : index
      %c0_28 = arith.constant 0 : index
      %52 = vector.load %arg9[%c0_27, %c0_28] : memref<8x1xf32, #tpu.memory_space<vmem>>, vector<8x1xf32>
      tpu.vector_store %arg9[%c0_27, %c0_28], %51 {strides = array<i32>} : memref<8x1xf32, #tpu.memory_space<vmem>>, vector<8x1xf32>,
    } else {
    }
    return
  }
  func.func @transform_0(%arg0: i32, %arg1: i32) -> (i32, i32, i32) {
    %c0_i32 = arith.constant 0 : i32
    %c0_i32_0 = arith.constant 0 : i32
    return %arg1, %arg0, %c0_i32 : i32, i32, i32
  }
  func.func @transform_1(%arg0: i32, %arg1: i32) -> (i32, i32, i32) {
    %c0_i32 = arith.constant 0 : i32
    %c0_i32_0 = arith.constant 0 : i32
    %c0_i32_1 = arith.constant 0 : i32
    %c0_i32_2 = arith.constant 0 : i32
    return %c0_i32, %c0_i32_0, %c0_i32_1 : i32, i32, i32
  }
  func.func @transform_2(%arg0: i32, %arg1: i32) -> (i32, i32) {
    %c0_i32 = arith.constant 0 : i32
    %c0_i32_0 = arith.constant 0 : i32
    %c0_i32_1 = arith.constant 0 : i32
    return %c0_i32, %c0_i32_0 : i32, i32
  }
  func.func @transform_3(%arg0: i32, %arg1: i32) -> (i32, i32) {
    %c0_i32 = arith.constant 0 : i32
    %c0_i32_0 = arith.constant 0 : i32
    return %arg0, %c0_i32 : i32, i32
  }
  func.func @transform_4(%arg0: i32, %arg1: i32) -> (i32, i32) {
    %c0_i32 = arith.constant 0 : i32
    %c0_i32_0 = arith.constant 0 : i32
    return %arg0, %c0_i32 : i32, i32
  }
  func.func @transform_5(%arg0: i32, %arg1: i32) -> (i32, i32) {
    %c0_i32 = arith.constant 0 : i32
    %c0_i32_0 = arith.constant 0 : i32
    return %arg0, %c0_i32 : i32, i32
  }
  func.func @transform_6(%arg0: i32, %arg1: i32) -> (i32, i32) {
    %c0_i32 = arith.constant 0 : i32
    %c0_i32_0 = arith.constant 0 : i32
    return %arg0, %c0_i32 : i32, i32
  }
  func.func @transform_7(%arg0: i32, %arg1: i32) -> (i32, i32) {
    %c0_i32 = arith.constant 0 : i32
    %c0_i32_0 = arith.constant 0 : i32
    return %arg0, %c0_i32 : i32, i32
  }
}

</mosaic_0001>

<bundles_post_ra>
// kernel: tpu_custom_call.1
= control target key start
LH: loop header
LB: loop body
LE: loop exit
PB: predicated region body
PF: predicated region fallthrough
CT: control target
= control target key end

     0   :  { %s1226_s0 = inlined_call_operand.vmem [shape: bf16[4,16,32], index: 0, kind: input, shape index: {}]   ;;  %s1227_s1 = inlined_call_operand.hbm [shape: bf16[4,32,128], index: 1, kind: input, shape index: {}]   ;;  %s1228_s2 = inlined_call_operand.vmem [shape: f32[1,128], index: 2, kind: input, shape index: {}]   ;;  %s1229_s3 = inlined_call_operand.vmem [shape: s32[16,1], index: 3, kind: input, shape index: {}]   ;;  %s1230_s4 = inlined_call_operand.vmem [shape: f32[16,1], index: 4, kind: input, shape index: {}]   ;;  %s1231_s5 = inlined_call_operand.hbm [shape: f32[16,128], index: 5, kind: output, shape index: {0}]   ;;  %s1232_s6 = inlined_call_operand.vmem [shape: s32[16,1], index: 6, kind: output, shape index: {1}]   ;;  %s1233_s7 = inlined_call_operand.vmem [shape: f32[16,1], index: 7, kind: output, shape index: {2}]  }
   0x1   :  { %1243 = sst [smem:[#allocation15_spill]] %s1227_s1 }
   0x2   :  { %13 = vsyncpa [#allocation3], 0 }
   0x3   :  { %14 = vsyncpa [#allocation4], 0 }
   0x4   :  { %16 = vsyncpa [#allocation4 + $0x1], 0  ;;  %s1004_s24 = smov 0   ;;  %s1006_s25 = smov 0  }
   0x5   :  { %s1008_s26 = smov 0   ;;  %s1010_s27 = smov 0  }
   0x6   :  { %s1012_s28 = smov 0   ;;  %s1014_s29 = smov 0  }
   0x7   :  { %s1016_s30 = smov 0   ;;  %s1018_s8 = smov 0  }
   0x8 LB: > { %1244 = sst [smem:[#allocation8_spill]] %s933_s26  ;;  %s693_s9 = sadd.s32 4294967295, %s953_s8   ;;  %s953_s8 = sphi %s1018_s8, %s22_s8   ;;  %s949_s30 = sphi %s1016_s30, %s1269_s30   ;;  %s945_s29 = sphi %s1014_s29, %s1268_s29   ;;  %s941_s28 = sphi %s1012_s28, %s1267_s28   ;;  %s937_s27 = sphi %s1010_s27, %s1266_s27   ;;  %s933_s26 = sphi %s1008_s26, %s1265_s26   ;;  %s929_s25 = sphi %s1006_s25, %s1271_s25   ;;  %s925_s24 = sphi %s1004_s24, %s1270_s24  }
   0x9   : > { %1245 = sst [smem:[#allocation9_spill]] %s945_s29  ;;  %s694_s10 = sadd.s32 4294967294, %s953_s8  }
   0xa   : > { %1246 = sst [smem:[#allocation10_spill]] %s949_s30  ;;  %s31_s11 = sadd.s32 1, %s945_s29 }
   0xb   : > { %s34_s12 = sadd.s32 1, %s949_s30  ;;  %p32_p0 = scmp.ge.s32.totalorder %s31_s11, 4 }
   0xc   : > { %s163_s13 = sadd.s32 1, %s933_s26  ;;  %p173_p1 = scmp.ne.s32.totalorder %s933_s26, %s929_s25 }
   0xd   : > { %p174_p2 = scmp.eq.s32.totalorder %s693_s9, 7  ;;  %s1273_s11 = smov (%p32_p0, %s31_s11), 0 }
   0xe   : > { %1247 = sst [smem:[#allocation11_spill]] %s1273_s11  ;;  %s1275_s12 = smov (!%p32_p0, %s34_s12), %s949_s30 }
   0xf   : > { %p1054_p3 = por %p174_p2, %p173_p1  ;;  %p179_p4 = scmp.ne.s32.totalorder %s929_s25, %s925_s24 }
  0x10   : > { %p36_p5 = scmp.ge.s32.totalorder %s1275_s12, 2  ;;  %p180_p6 = scmp.eq.s32.totalorder %s694_s10, 7 }
  0x11   : > { %s1248_s14 = scalar_select %p1054_p3, 1, 0 }
  0x12   : > { %p695_p7 = scmp.ge.s32.totalorder %s953_s8, 1  ;;  %p239_p8 = scmp.lt.s32.totalorder %s953_s8, 9 }
  0x13   : > { %s1277_s12 = smov (%p36_p5, %s1275_s12), 0  ;;  %p1064_p9 = por %p180_p6, %p179_p4 }
  0x14   : > { %1249 = sst [smem:[#allocation12_spill]] %s1277_s12  ;;  %p1068_p10 = pnand %p695_p7, %p239_p8 }
  0x15   : > { %s1250_s15 = scalar_select %p1064_p9, 1, 0 }
  0x16   : > { %s1252_s16 = scalar_select %p1068_p10, 1, 0 }
  0x17   : > { %1251 = sst [smem:[#allocation13_spill]] %s1250_s15  ;;  %s160_s17 = ssub.s32 %s949_s30, %s1277_s12 }
  0x18   : > { %p161_p11 = scmp.eq.s32.totalorder %s160_s17, 0  ;;  %p738_p12 = pneg %p1068_p10 }
  0x19   : > { %p1076_p13 = scmp.eq.s32.totalorder %s693_s9, 0  ;;  %s955_s20 = smov [#allocation2]  }
  0x1a   : > { %s1081_s19 = scalar_select %p161_p11, %s933_s26, %s163_s13  }
  0x1b   : > { %s1253_s18 = scalar_select %p1076_p13, 1, 0 }
  0x1c   : > { %1254 = sst [smem:[#allocation14_spill]] %s1081_s19  ;;  %s251_s21 = sshll.u32 %s955_s20, 4  ;;  %s252_s21 = int_to_ptr.vmem [resolvable:$true] %s251_s21 }
  0x1d   : > { %p1085_p0 = pnand %p1076_p13, %p738_p12  ;;  %s1256_s1 = sld [smem:[#allocation15_spill]] }
  0x1f   : > { %p829_p2 = pneg %p1085_p0 }
  0x23   : > { %s827_s17 = scalar_lea.hbm %s1256_s1, 1024 }
  0x24   : > { %p828_p1 = scmp.ne.s32.totalorder %s1256_s1, %s827_s17  ;;  %p834_p6 = scmp.lt.u32.totalorder %s827_s17, %s1256_s1 }
  0x26   : > { %p830_p4 = pnand %p829_p2, %p828_p1 }
  0x28   : > { %p831_p5 = pneg %p830_p4 }
  0x2a   : > { %p836_p7 = pnand %p834_p6, %p831_p5 }
  0x2c   : > { %839 = shalt.err (!%p836_p7)
}
  0x2d   : > { %s840_s11 = scalar_lea.vmem %s252_s21, 1024  ;;  %p848_p9 = scmp.lt.s32.totalorder %s252_s21, %s252_s21 }
  0x2e   : > { %p841_p8 = scmp.ne.s32.totalorder %s252_s21, %s840_s11  ;;  %p849_p3 = scmp.lt.s32.totalorder %s840_s11, %s840_s11 }
  0x30   : > { %p843_p11 = pnand %p841_p8, %p829_p2  ;;  %p850_p13 = por %p849_p3, %p848_p9 }
  0x32   : > { %p844_p12 = pneg %p843_p11 }
  0x34   : > { %p851_p10 = pnand %p850_p13, %p844_p12 }
  0x36   : > { %854 = shalt.err (!%p851_p10)
}
  0x37   : > { %s956_s12 = smov 64   ;;  %s957_s23 = smov 4  }
  0x38   : > { %741 = dma.hbm_to_vmem [thread:$0]  (!%p1085_p0), %s1256_s1, 1024, %s252_s21, [#allocation3], %s956_s12, %s956_s12, %s957_s23  }
  0x39   : > { %p1257_p1 = scmp.ne.s32.totalorder %s1252_s16, 0 }
  0x3a   : > { %p1258_p4 = scmp.ne.s32.totalorder (!%p1257_p1), %s1253_s18, 0 }
  0x3b   : > { %295 = sbr.rel (%p1257_p1) target bundleno = 782 (0x30e), region = 40 }
  0x42   : > { %916 = dma.done.wait (%p1258_p4), [#allocation3], 1024  }
  0x43   : > { %918 = vsyncadd (%p1258_p4), [#allocation3], 4294966272  ;;  %p346_p3 = scmp.lt.s32.totalorder %s937_s27, 3  ;;  %p348_p9 = scmp.lt.s32.totalorder %s941_s28, 1 }
  0x44   : > { %s720_s11 = sshll.u32 %s937_s27, 4  ;;  %s1259_s1 = sand.u32 1, %s929_s25  }
  0x45   : > { %s347_s21 = scalar_select %p346_p3, %s937_s27, 3 }
  0x46   : > { %s349_s17 = scalar_select %p348_p9, %s941_s28, 1 }
  0x47   : > { %s701_s16 = sshll.u32 %s347_s21, 1  ;;  %p709_p10 = scmp.ne.s32.totalorder %s937_s27, 0 }
  0x48   : > { %s351_s13 = sadd.s32 %s701_s16, %s349_s17  ;;  %s1117_s20 = sshll.u32 %s349_s17, 3  ;;  %v958_v5 = vmov (!%p709_p10), 0.0  }
  0x49   : > { %s702_s18 = sshll.u32 %s351_s13, 2  ;;  %s357_s10 = scalar_lea.vmem %s1229_s3, %s1117_s20 }
  0x4a   : > { %s353_s22 = scalar_lea.vmem %s1226_s0, %s702_s18  ;;  %s361_s21 = scalar_lea.vmem %s1230_s4, %s1117_s20 }
  0x4b   : > { %s374_s16 = scalar_lea.vmem [#allocation2], %s720_s11  ;;  %s365_s13 = scalar_lea.vmem %s1232_s6, %s1117_s20  ;;  %v371_v3 = vld [vmem:[%s353_s22] sm:$0xf] }
  0x4c   : > { %v375_v0 = vld [vmem:[%s374_s16] sm:$0xf]  ;;  %v376_v1 = vld [vmem:[%s374_s16 + $0x4] sm:$0xf]  ;;  %v377_v2 = vld [vmem:[%s374_s16 + $0x8] sm:$0xf]  ;;  %s369_s12 = scalar_lea.vmem %s1233_s7, %s1117_s20 }
  0x4d   : > { %v378_v4 = vld [vmem:[%s374_s16 + $0xc] sm:$0xf]  ;;  %s700_s18 = sshll.u32 %s1259_s1, 3  ;;  %382 = sbr.rel (%p709_p10) target bundleno = 84 (0x54), region = 48 }
  0x4e   : > { %s1140_s23 = scalar_lea.vmem [#allocation5], %s700_s18 }
  0x4f   : > { %383 = vst [vmem:[%s1140_s23] sm:$0xff] (!%p709_p10), %v958_v5 }
  0x54 PF: > { %v710_v6 = vcombine.low %v375_v0, %v376_v1  ;;  %v959_v7 = vmov 0.0   ;;  %vm960_vm0 = vmmov 0   ;;  %v711_v8 = vcombine.low %v377_v2, %v378_v4  ;;  %p713_p13 = scmp.ne.s32.totalorder %s937_s27, 3 }
  0x55   : > { %724 = vmatprep.subr.bf16.mxu0 %v959_v7  ;;  %728 = vmatprep.mubr.msk.bf16.mxu0 %vm960_vm0, %v959_v7  ;;  %vm397_vm1 = vcmask 261120   ;;  %v714_v16 = vld [vmem:[%s1228_s2] ss:$0 sm:$0xff] (!%p713_p13)  ;;  %v961_v19 = vmov (!%p713_p13), 0   ;;  %v459_v20 = vlaneseq (!%p713_p13)  ;;  %v962_v40 = vmov (!%p713_p13), 0.0  }
  0x56   : > { %725 = vmatpush3.bf16.msra.mxu0 %v710_v6  ;;  %v384_v9 = vld [vmem:[%s1140_s23] sm:$0xff]  ;;  %821 = vset.pattern.permute.xlu1 (!%p713_p13), %v961_v19  ;;  %vm477_vm6 = vcmask (!%p713_p13), 7168  }
  0x57   : > { %726 = vmatprep.subr.bf16.mxu0 %v959_v7  ;;  %v479_v17 = vld [vmem:[%s357_s10] sm:$0xff] (!%p713_p13)  ;;  %822 = vset.pattern.permute.xlu0 (!%p713_p13), %v961_v19  ;;  %v460_v21 = vand.u32 (!%p713_p13), 127, %v459_v20 }
  0x58   : > { %489 = vperm.xlu1 (!%p713_p13), %821, %v479_v17   ;;  %vm495_vm5 = vcmp.ne.s32.totalorder (!%p713_p13), %v479_v17, 4294967196  ;;  %v500_v43 = vld [vmem:[%s361_s21] sm:$0xff] (!%p713_p13) }
  0x59   : > { %v715_v41 = vsel (!%p713_p13), %vm495_vm5, 1.0, %v962_v40 }
  0x5a   : > { %727 = vmatpush3.bf16.msra.mxu0 %v711_v8 }
  0x5d   : > { %729 = vmatmul.mubr.msk.bf16.vlgmr.msra.gmra.mrb[0].mxu0 %vm397_vm1, %v371_v3 }
  0xd7   : > { %v490_v25 = vpop.permute.xlu1 (!%p713_p13), %489 }
  0xd8   : > { %vm491_vm3 = vcmp.eq.s32.totalorder (!%p713_p13), %v460_v21, %v490_v25 }
 0x12d   : > { %446 = sbr.rel (%p713_p13) target bundleno = 756 (0x2f4), region = 52 }
 0x130   : > { %v435_v10 = vpop.f32.mrb[0].mxu0 }
 0x131   : > { %v441_v11 = vadd.f32 %v435_v10, %v384_v9  ;;  %v730_v12 = vpop.f32.mrb[1].mxu0 }
 0x132   : > { %v438_v13 = vpop.f32.mrb[2].mxu0 }
 0x133   : > { %442 = vst [vmem:[%s1140_s23] sm:$0xff] %v441_v11  ;;  %v731_v14 = vpop.f32.mrb[3].mxu0 }
 0x13a   : > { %v447_v15 = vld [vmem:[%s1140_s23] sm:$0xff] }
 0x13b   : > { %v455_v18 = vadd.f32 %v714_v16, %v447_v15 }
 0x13d   : > { %457 = vmax.xlane.f32.xlu0 %v455_v18  ;;  %456 = vst [vmem:[%s1140_s23] sm:$0xff] %v455_v18  ;;  %v492_v29 = vsel %vm491_vm3, %v455_v18, 0.0 }
 0x1ca   : > { %v458_v22 = vpop.xlane.xlu0 %457 }
 0x1cb   : > { %vm461_vm2 = vcmp.eq.f32.partialorder %v455_v18, %v458_v22  ;;  %v480_v23 = vsub.f32 %v455_v18, %v458_v22 }
 0x1cc   : > { %v462_v24 = vsel %vm461_vm2, %v460_v21, 128 }
 0x1cd   : > { %v481_v26 = vmul.f32 1.442695, %v480_v23  ;;  %v464_v27 = vshra.s32 %v462_v24, 16  ;;  %v463_v31 = vand.u32 65535, %v462_v24 }
 0x1cf   : > { %823 = vpow2.f32 %v481_v26  ;;  %v466_v28 = vcvt.s32.f32 %v464_v27  ;;  %v465_v33 = vcvt.s32.f32 %v463_v31 }
 0x1d1   : > { %467 = vmin.xlane.f32.xlu0 %v466_v28 }
 0x1d5   : > { %493 = vadd.xlane.f32.xlu0 %v492_v29 }
 0x1d9   : > { %v824_v30 = vpop.eup %823 }
 0x1da   : > { %483 = vadd.xlane.f32.xlu1 %v824_v30 }
 0x25e   : > { %v468_v32 = vpop.xlane.xlu0 %467 }
 0x25f   : > { %vm469_vm4 = vcmp.eq.f32.partialorder %v466_v28, %v468_v32  ;;  %v474_v46 = vcvt.f32.s32 %v468_v32 }
 0x260   : > { %v470_v34 = vsel %vm469_vm4, %v465_v33, inf }
 0x261   : > { %471 = vmin.xlane.f32.xlu0 %v470_v34  ;;  %v475_v48 = vshll.u32 %v474_v46, 16 }
 0x262   : > { %v494_v38 = vpop.xlane.xlu0 %493 }
 0x267   : > { %v484_v35 = vpop.xlane.xlu1 %483 }
 0x268   : > { %825 = vlog2.f32 %v484_v35 }
 0x272   : > { %v826_v36 = vpop.eup %825 }
 0x273   : > { %v486_v37 = vmul.f32 0.6931472, %v826_v36 }
 0x275   : > { %v487_v39 = vadd.f32 %v486_v37, %v458_v22 }
 0x277   : > { %v498_v42 = vsub.f32 %v487_v39, %v494_v38 }
 0x279   : > { %v499_v44 = vmul.f32 %v715_v41, %v498_v42 }
 0x27b   : > { %v501_v45 = vmul.f32 %v500_v43, %v499_v44 }
 0x27d   : > { %502 = vst.msk [vmem:[%s369_s12] sm:$0xff] %vm477_vm6, %v501_v45 }
 0x2ee   : > { %v472_v47 = vpop.xlane.xlu0 %471 }
 0x2ef   : > { %v473_v49 = vcvt.f32.s32 %v472_v47 }
 0x2f1   : > { %v476_v50 = vadd.s32 %v475_v48, %v473_v49 }
 0x2f3   : > { %478 = vst.msk [vmem:[%s365_s13] sm:$0xff] %vm477_vm6, %v476_v50 }
 0x2f4 PF: > { %s717_s21 = sshll.u32 %s941_s28, 7  ;;  %s525_s1 = sshll.u32 %s1140_s23, 4  ;;  %s526_s1 = int_to_ptr.vmem [resolvable:$true] %s525_s1 }
 0x2f5   : > { %s1176_s12 = scalar_lea.hbm %s1231_s5, %s717_s21  ;;  %s1260_s18 = sand.u32 1, %s929_s25  }
 0x2f6   : > { %s504_s26 = scalar_lea.sflag [#allocation4], %s1260_s18  ;;  %s855_s29 = scalar_lea.vmem %s526_s1, 128 }
 0x2f7   : > { %p856_p0 = scmp.ne.s32.totalorder %s526_s1, %s855_s29  ;;  %p1261_p2 = scmp.ne.s32.totalorder %s1248_s14, 0 }
 0x2f8   : > { %s963_s20 = smov [#allocation5]  }
 0x2f9   : > { %p857_p5 = pnand %p856_p0, %p1261_p2  ;;  %s859_s13 = sshll.u32 %s963_s20, 4  ;;  %s860_s13 = int_to_ptr.vmem [resolvable:$false] %s859_s13 }
 0x2fa   : > { %s861_s30 = scalar_lea.vmem %s860_s13, 256  ;;  %p862_p7 = scmp.lt.s32.totalorder %s526_s1, %s860_s13 }
 0x2fb   : > { %p858_p6 = pneg %p857_p5  ;;  %p863_p8 = scmp.lt.s32.totalorder %s861_s30, %s855_s29 }
 0x2fd   : > { %p864_p11 = por %p863_p8, %p862_p7 }
 0x2ff   : > { %p865_p12 = pnand %p864_p11, %p858_p6 }
 0x301   : > { %868 = shalt.err (!%p865_p12)
}
 0x302   : > { %s869_s28 = scalar_lea.hbm %s1176_s12, 128  ;;  %s873_s27 = scalar_lea.hbm %s1231_s5, 256 }
 0x303   : > { %p870_p1 = scmp.ne.s32.totalorder %s1176_s12, %s869_s28  ;;  %p874_p9 = scmp.lt.u32.totalorder %s1176_s12, %s1231_s5 }
 0x304   : > { %p875_p10 = scmp.lt.u32.totalorder %s873_s27, %s869_s28  ;;  %p877_p0 = scmp.lt.u32.totalorder %s869_s28, %s1176_s12 }
 0x305   : > { %p871_p4 = pnand %p870_p1, %p1261_p2 }
 0x306   : > { %p876_p13 = por %p875_p10, %p874_p9 }
 0x307   : > { %p872_p3 = pneg %p871_p4 }
 0x308   : > { %p878_p5 = por %p877_p0, %p876_p13 }
 0x30a   : > { %p879_p6 = pnand %p878_p5, %p872_p3 }
 0x30c   : > { %882 = shalt.err (!%p879_p6)
}
 0x30d   : > { %736 = dma.vmem_to_hbm [thread:$0]  (%p1261_p2), %s526_s1, 128, %s1176_s12, %s504_s26  }
 0x30e PF: > { %s1262_s22 = sld [smem:[#allocation13_spill]]  ;;  %p748_p7 = scmp.ge.s32.totalorder %s953_s8, 2 }
 0x30f   : > { %s543_s10 = sand.u32 1, %s925_s24  }
 0x310   : > { %s544_s9 = scalar_lea.sflag [#allocation4], %s543_s10 }
 0x314   : > { %p1263_p8 = scmp.ne.s32.totalorder %s1262_s22, 0 }
 0x316   : > { %p743_p11 = pnand %p748_p7, %p1263_p8 }
 0x318   : > { %920 = dma.done.wait (!%p743_p11), %s544_s9, 128  }
 0x319   : > { %922 = vsyncadd (!%p743_p11), %s544_s9, 4294967168  ;;  %s22_s8 = sadd.s32 1, %s953_s8   ;;  %s1264_s21 = sld [smem:[#allocation8_spill]] }
 0x31a   : > { %p19_p12 = scmp.ge.s32.totalorder %s22_s8, 10   ;;  %s1265_s26 = sld [smem:[#allocation14_spill]] }
 0x31b   : > { %s1266_s27 = sld [smem:[#allocation9_spill]]  ;;  %s1267_s28 = sld [smem:[#allocation10_spill]] }
 0x31c   : > { %s1268_s29 = sld [smem:[#allocation11_spill]]  ;;  %s1269_s30 = sld [smem:[#allocation12_spill]] }
 0x31d   : > { %s1270_s24 = smov %s929_s25  ;;  %21 = sbr.rel (!%p19_p12) target bundleno = 8 (0x8), region = 119 }
 0x31f   : > { %s1271_s25 = smov %s1264_s21 }
 0x324   :  { %563 = vsyncpa [#allocation3], 1 }
 0x325   :  { %565 = vsyncpa [#allocation3 + $0x1], 1 }
 0x326   :  { %566 = vsyncpa [#allocation4], 1 }
 0x327   :  { %568 = vsyncpa [#allocation4 + $0x1], 1 }

</bundles_post_ra>
